<compile_context>
chip_gen: v5e
topology: v5e:2x2
jax: 0.10.0
libtpu: 0.0.40
codegen_flags: <defaults>
</compile_context>

<pallas_src>
import functools

import jax
import jax.numpy as jnp
from jax.experimental import pallas as pl
from jax.experimental.pallas import tpu as pltpu

LANE = 128


def _round_up(x, m):
    return (x + m - 1) // m * m


def _pick_tile(total, request, step=LANE):
    """Largest multiple of `step` that divides `total` and is <= request."""
    request = max(step, min(request, total))
    best = step
    cand = step
    while cand <= request:
        if total % cand == 0:
            best = cand
        cand += step
    return best


# ---------------------------------------------------------------------------
# Phase 1 kernel: fused sequential GRU recurrence over all T decode steps
# ---------------------------------------------------------------------------
def _gru_steps_kernel(tok_ref,        # SMEM (T,) int32 (scalar prefetch; used by index_maps)
                      emb_ref,        # (1, 1, Hp) bf16  gathered embedding row for step t
                      h0_ref,         # (L, 1, Hp) f32   initial hidden (fetched once)
                      w_ih_ref,       # (L, Hp, 3Hp) bf16  W_ih^T per layer (gate-padded)
                      w_hh_ref,       # (L, Hp, 3Hp) bf16  W_hh^T per layer (gate-padded)
                      b_ih_ref,       # (L, 1, 3Hp) f32
                      b_hh_ref,       # (L, 1, 3Hp) f32
                      x_out_ref,      # out (1, 1, Hp) bf16  GRU output of step t
                      h_out_ref,      # out (L, 1, Hp) f32   hidden; VMEM-resident carry
                      *, n_layers, h_pad):
    t = pl.program_id(0)
    H = h_pad

    # The hidden state is carried in the resident output block (constant
    # out-spec index map -> single HBM writeback at the end of the grid).
    @pl.when(t == 0)
    def _init():
        h_out_ref[...] = h0_ref[...]

    x = emb_ref[0]                                           # (1, Hp) bf16
    for l in range(n_layers):
        h_l = h_out_ref[l]                                   # (1, Hp) f32
        gi = jnp.dot(x, w_ih_ref[l],
                     preferred_element_type=jnp.float32) + b_ih_ref[l]
        gh = jnp.dot(h_l.astype(jnp.bfloat16), w_hh_ref[l],
                     preferred_element_type=jnp.float32) + b_hh_ref[l]
        # Gate slices are lane-dense: H is padded to a multiple of 128.
        r = jax.nn.sigmoid(gi[:, 0:H] + gh[:, 0:H])
        z = jax.nn.sigmoid(gi[:, H:2 * H] + gh[:, H:2 * H])
        n = jnp.tanh(gi[:, 2 * H:3 * H] + r * gh[:, 2 * H:3 * H])
        h_new = (1.0 - z) * n + z * h_l
        h_out_ref[l] = h_new
        x = h_new.astype(jnp.bfloat16)                       # cast once per layer
    x_out_ref[0] = x
    # TODO(synk): if a bundle dump shows the M=1 gate matmuls weight-push bound,
    # stage the per-layer RHS across steps with pltpu.matmul_push_rhs/acc_lhs/pop.
    # TODO(synk): for serving throughput add a batch/beam dim (B>=8) to the
    # activations; at B=1 every matmul fills a single MXU row.


# ---------------------------------------------------------------------------
# Phase 2 kernel: batched output projection, standard tiled matmul
# ---------------------------------------------------------------------------
def _proj_kernel(x_ref,     # (t_tile, Hp)   bf16  GRU outputs for a block of steps
                 w_ref,     # (Hp, o_tile)   bf16  vocab tile of W_out^T
                 b_ref,     # (1, o_tile)    f32
                 o_ref):    # (t_tile, o_tile) f32
    o_ref[...] = (jnp.dot(x_ref[...], w_ref[...],
                          preferred_element_type=jnp.float32) + b_ref[...])


# ---------------------------------------------------------------------------
# VMEM budgeting
# ---------------------------------------------------------------------------
def _gru_vmem_bytes(L, Hp):
    w = 2 * 2 * (L * Hp * 3 * Hp * 2)      # w_ih + w_hh, double-buffered, bf16
    b = 2 * 2 * (L * 3 * Hp * 4)           # biases, double-buffered, f32
    h0 = 2 * L * Hp * 4
    emb = 2 * Hp * 2
    x_out = 2 * Hp * 2
    h_out = L * Hp * 4                     # resident output block
    return w + b + h0 + emb + x_out + h_out


def _proj_vmem_bytes(t_tile, o_tile, Hp):
    return 2 * (t_tile * Hp * 2 + Hp * o_tile * 2 + o_tile * 4
                + t_tile * o_tile * 4)


def _vmem_limit(estimate):
    # Explicit scoped-VMEM budget: estimate + headroom, clamped to sane bounds
    # (floor at the usual 32 MiB default, never above v5e/v6e physical).
    return int(min(128 << 20, max(32 << 20, int(estimate * 1.25) + (2 << 20))))


# ---------------------------------------------------------------------------
# Wrappers
# ---------------------------------------------------------------------------
def decoder_rnn_decode(tokens, hidden, prepared, *, n_layers, hidden_size,
                       output_size, o_tile=2048, t_tile=512):
    """Run T decode steps (teacher-forced token sequence) in two fused calls.

    tokens: int32[T]; hidden: f32[n_layers, 1, hidden_size].
    Returns (logits f32[T, output_size], new_hidden f32[n_layers, 1, hidden_size]).
    Each step computes exactly DecoderRNN.forward(tokens[t], hidden_t).
    """
    L, H, O = n_layers, hidden_size, output_size
    Hp = prepared["w_ih_t"].shape[1]
    Op = prepared["w_out_t"].shape[1]
    T = int(tokens.shape[0])

    # Clamp tokens so the data-dependent embedding DMA can never go OOB.
    # (Behavioral difference vs nn.Embedding, which errors on OOB ids.)
    tokens = jnp.clip(jnp.asarray(tokens, jnp.int32), 0, O - 1)
    # Zero-padded hidden: padded lanes must stay zero (gate-pad invariant).
    h0 = jnp.zeros((L, 1, Hp), jnp.float32).at[:, :, :H].set(hidden)

    # -------- Phase 1: sequential GRU over all T decode steps --------
    gru_kernel = functools.partial(_gru_steps_kernel, n_layers=L, h_pad=Hp)
    gru_grid_spec = pltpu.PrefetchScalarGridSpec(
        num_scalar_prefetch=1,
        grid=(T,),
        in_specs=[
            # Embedding: gather only row tok[t]; the table never leaves HBM.
            pl.BlockSpec((1, 1, Hp), lambda t, tok: (tok[t], 0, 0)),
            # Initial hidden + GRU weights: constant index maps -> DMA'd once,
            # VMEM-resident across all T steps.
            pl.BlockSpec((L, 1, Hp), lambda t, tok: (0, 0, 0)),
            pl.BlockSpec((L, Hp, 3 * Hp), lambda t, tok: (0, 0, 0)),
            pl.BlockSpec((L, Hp, 3 * Hp), lambda t, tok: (0, 0, 0)),
            pl.BlockSpec((L, 1, 3 * Hp), lambda t, tok: (0, 0, 0)),
            pl.BlockSpec((L, 1, 3 * Hp), lambda t, tok: (0, 0, 0)),
            # TODO(synk): on v7x (64 MiB VMEM) single-buffer these constant
            # blocks (pipeline_mode=pl.Buffered(1)) or split the weight stack
            # per layer once L*Hp*3Hp bf16 (x2 tensors) outgrows the budget.
        ],
        out_specs=[
            pl.BlockSpec((1, 1, Hp), lambda t, tok: (t, 0, 0)),     # x_t (bf16)
            pl.BlockSpec((L, 1, Hp), lambda t, tok: (0, 0, 0)),     # hidden (resident)
        ],
    )
    x_all, h_pad_out = pl.pallas_call(
        gru_kernel,
        out_shape=(jax.ShapeDtypeStruct((T, 1, Hp), jnp.bfloat16),
                   jax.ShapeDtypeStruct((L, 1, Hp), jnp.float32)),
        grid_spec=gru_grid_spec,
        compiler_params=pltpu.CompilerParams(
            dimension_semantics=("arbitrary",),          # sequential recurrence
            vmem_limit_bytes=_vmem_limit(_gru_vmem_bytes(L, Hp))),
    )(tokens, prepared["embedding"], h0, prepared["w_ih_t"],
      prepared["w_hh_t"], prepared["b_ih"], prepared["b_hh"])

    # -------- Phase 2: vocab projection batched over all T steps --------
    tt = min(t_tile, _round_up(T, 8))
    Tp = _round_up(T, tt)
    ot = _pick_tile(Op, o_tile)       # largest 128-multiple divisor of Op <= o_tile
    x_mat = jnp.zeros((Tp, Hp), jnp.bfloat16).at[:T].set(x_all[:, 0, :])

    logits_pad = pl.pallas_call(
        _proj_kernel,
        out_shape=jax.ShapeDtypeStruct((Tp, Op), jnp.float32),
        grid=(Tp // tt, Op // ot),
        in_specs=[pl.BlockSpec((tt, Hp), lambda i, j: (i, 0)),
                  pl.BlockSpec((Hp, ot), lambda i, j: (0, j)),
                  pl.BlockSpec((1, ot), lambda i, j: (0, j))],
        out_specs=pl.BlockSpec((tt, ot), lambda i, j: (i, j)),
        compiler_params=pltpu.CompilerParams(
            # Independent tiles: lets v7x shard them across both TensorCores.
            dimension_semantics=("parallel", "parallel"),
            vmem_limit_bytes=_vmem_limit(_proj_vmem_bytes(tt, ot, Hp))),
    )(x_mat, prepared["w_out_t"], prepared["b_out"])

    return logits_pad[:T, :O], h_pad_out[:, :, :H]


def decoder_rnn_forward(token, hidden, prepared, *, n_layers, hidden_size,
                        output_size, o_tile=2048, t_tile=512):
    """Single-step forward: identical semantics to DecoderRNN.forward(input, hidden)."""
    token = jnp.asarray(token, jnp.int32).reshape((1,))
    return decoder_rnn_decode(token, hidden, prepared, n_layers=n_layers,
                              hidden_size=hidden_size, output_size=output_size,
                              o_tile=o_tile, t_tile=t_tile)


def init_hidden(n_layers, hidden_size):
    return jnp.zeros((n_layers, 1, hidden_size), jnp.float32)


# ---------------------------------------------------------------------------
# Parameters (PyTorch-shaped) and kernel-layout preparation
# ---------------------------------------------------------------------------
def init_raw_params(key, *, n_layers, hidden_size, output_size):
    """Synthetic params with nn.Embedding / nn.GRU / nn.Linear shapes (f32)."""
    L, H, O = n_layers, hidden_size, output_size
    k = 1.0 / jnp.sqrt(jnp.float32(H))
    keys = jax.random.split(key, 7)
    u = lambda kk, shape: jax.random.uniform(kk, shape, jnp.float32, -k, k)
    return {
        "embedding": jax.random.normal(keys[0], (O, H), jnp.float32),   # nn.Embedding
        "gru_w_ih": u(keys[1], (L, 3 * H, H)),                          # nn.GRU weight_ih_l*
        "gru_w_hh": u(keys[2], (L, 3 * H, H)),                          # nn.GRU weight_hh_l*
        "gru_b_ih": u(keys[3], (L, 3 * H)),
        "gru_b_hh": u(keys[4], (L, 3 * H)),
        "out_w": u(keys[5], (O, H)),                                    # nn.Linear weight
        "out_b": u(keys[6], (O,)),
    }


def prepare_params(raw, *, n_layers, hidden_size, output_size):
    """Transpose, pad H/O to 128-lane boundaries (per gate), cast weights to bf16."""
    L, H, O = n_layers, hidden_size, output_size
    Hp = _round_up(H, LANE)
    Op = _round_up(O, LANE)

    # Embedding stored (O, 1, Hp) bf16 so a single-row gather block (1, 1, Hp)
    # spans the full last two dims and the per-step row DMA is half-size.
    emb = (jnp.zeros((O, 1, Hp), jnp.float32)
           .at[:, 0, :H].set(raw["embedding"])
           .astype(jnp.bfloat16))

    def pad_gate_w(w):              # torch (3H, H) -> transposed, per-gate padded (Hp, 3*Hp)
        w_t = w.T                   # (H, 3H), columns ordered [r|z|n]
        w3 = w_t.reshape(H, 3, H)
        out = jnp.zeros((Hp, 3, Hp), jnp.float32).at[:H, :, :H].set(w3)
        return out.reshape(Hp, 3 * Hp)

    def pad_gate_b(b):              # (3H,) -> (1, 3*Hp), per-gate padded
        b3 = b.reshape(3, H)
        out = jnp.zeros((3, Hp), jnp.float32).at[:, :H].set(b3)
        return out.reshape(1, 3 * Hp)

    w_ih_t = jnp.stack([pad_gate_w(raw["gru_w_ih"][l]) for l in range(L)], 0).astype(jnp.bfloat16)
    w_hh_t = jnp.stack([pad_gate_w(raw["gru_w_hh"][l]) for l in range(L)], 0).astype(jnp.bfloat16)
    b_ih = jnp.stack([pad_gate_b(raw["gru_b_ih"][l]) for l in range(L)], 0)
    b_hh = jnp.stack([pad_gate_b(raw["gru_b_hh"][l]) for l in range(L)], 0)

    w_out_t = jnp.zeros((Hp, Op), jnp.float32).at[:H, :O].set(raw["out_w"].T).astype(jnp.bfloat16)
    b_out = jnp.zeros((1, Op), jnp.float32).at[0, :O].set(raw["out_b"])

    return {"embedding": emb, "w_ih_t": w_ih_t, "w_hh_t": w_hh_t,
            "b_ih": b_ih, "b_hh": b_hh, "w_out_t": w_out_t, "b_out": b_out}


# ---------------------------------------------------------------------------
# Pure-JAX reference (mirrors the kernels' bf16-weight math exactly)
# ---------------------------------------------------------------------------
def reference_decode(tokens, hidden, prepared, *, n_layers, hidden_size, output_size):
    L, H, O = n_layers, hidden_size, output_size
    Hp = prepared["w_ih_t"].shape[1]
    tokens = jnp.clip(jnp.asarray(tokens, jnp.int32), 0, O - 1)
    h = jnp.zeros((L, 1, Hp), jnp.float32).at[:, :, :H].set(hidden)
    logits_all = []
    for t in range(tokens.shape[0]):
        x = prepared["embedding"][tokens[t], 0][None, :]          # (1, Hp) bf16
        for l in range(L):
            h_l = h[l]
            gi = jnp.dot(x, prepared["w_ih_t"][l],
                         preferred_element_type=jnp.float32) + prepared["b_ih"][l]
            gh = jnp.dot(h_l.astype(jnp.bfloat16), prepared["w_hh_t"][l],
                         preferred_element_type=jnp.float32) + prepared["b_hh"][l]
            r = jax.nn.sigmoid(gi[:, 0:Hp] + gh[:, 0:Hp])
            z = jax.nn.sigmoid(gi[:, Hp:2 * Hp] + gh[:, Hp:2 * Hp])
            n = jnp.tanh(gi[:, 2 * Hp:3 * Hp] + r * gh[:, 2 * Hp:3 * Hp])
            h_new = (1.0 - z) * n + z * h_l
            h = h.at[l].set(h_new)
            x = h_new.astype(jnp.bfloat16)
        logits = jnp.dot(x, prepared["w_out_t"],
                         preferred_element_type=jnp.float32) + prepared["b_out"]
        logits_all.append(logits[0, :O])
    return jnp.stack(logits_all, 0), h[:, :, :H]


if __name__ == "__main__":
    key = jax.random.PRNGKey(0)

    # Two small configs: single-layer and multi-layer GRU stacks.
    for (n_layers, hidden_size, output_size, T) in [(1, 32, 64, 8), (2, 48, 100, 5)]:
        key, pkey, hkey, tkey = jax.random.split(key, 4)
        raw = init_raw_params(pkey, n_layers=n_layers, hidden_size=hidden_size,
                              output_size=output_size)
        prep = prepare_params(raw, n_layers=n_layers, hidden_size=hidden_size,
                              output_size=output_size)

        tokens = jax.random.randint(tkey, (T,), 0, output_size, dtype=jnp.int32)
        hidden0 = jax.random.normal(hkey, (n_layers, 1, hidden_size), jnp.float32)

        # Fused multi-step decode: one GRU call for all T steps + one batched projection.
        logits_seq, h_final = decoder_rnn_decode(
            tokens, hidden0, prep, n_layers=n_layers,
            hidden_size=hidden_size, output_size=output_size)
        jax.block_until_ready((logits_seq, h_final))

        ref_logits_seq, ref_h_final = reference_decode(
            tokens, hidden0, prep, n_layers=n_layers,
            hidden_size=hidden_size, output_size=output_size)

        assert logits_seq.shape == (T, output_size)
        assert h_final.shape == (n_layers, 1, hidden_size)
        assert jnp.allclose(logits_seq, ref_logits_seq, atol=1e-3, rtol=1e-3)
        assert jnp.allclose(h_final, ref_h_final, atol=1e-3, rtol=1e-3)

    # Single-step call: exact DecoderRNN.forward(input, hidden) semantics.
    logits1, h1 = decoder_rnn_forward(
        tokens[0], hidden0, prep, n_layers=n_layers,
        hidden_size=hidden_size, output_size=output_size)
    jax.block_until_ready((logits1, h1))
    ref_l1, ref_h1 = reference_decode(
        tokens[:1], hidden0, prep, n_layers=n_layers,
        hidden_size=hidden_size, output_size=output_size)
    assert logits1.shape == (1, output_size)
    assert jnp.allclose(logits1, ref_l1, atol=1e-3, rtol=1e-3)
    assert jnp.allclose(h1, ref_h1, atol=1e-3, rtol=1e-3)

    print("KERNEL_OK")
</pallas_src>

<mosaic_0001>
module attributes {stable_mosaic.version = 11 : i64} {
  func.func @_gru_steps_kernel(%arg0: i32, %arg1: memref<8xi32, #tpu.memory_space<smem>>, %arg2: memref<1x1x128xbf16, #tpu.memory_space<vmem>>, %arg3: memref<1x1x128xf32, #tpu.memory_space<vmem>>, %arg4: memref<1x128x384xbf16, #tpu.memory_space<vmem>>, %arg5: memref<1x128x384xbf16, #tpu.memory_space<vmem>>, %arg6: memref<1x1x384xf32, #tpu.memory_space<vmem>>, %arg7: memref<1x1x384xf32, #tpu.memory_space<vmem>>, %arg8: memref<1x1x128xbf16, #tpu.memory_space<vmem>>, %arg9: memref<1x1x128xf32, #tpu.memory_space<vmem>>) attributes {dimension_semantics = [#tpu.dimension_semantics<arbitrary>], iteration_bounds = array<i64: 8>, scalar_prefetch = 1 : i64, scratch_operands = 0 : i64, tpu.core_type = #tpu.core_type<tc>, window_params = [{transform_indices = @transform_0, window_bounds = array<i64: 1, 1, 128>}, {pipeline_mode = #tpu.pipeline_mode<synchronous>, transform_indices = @transform_1, window_bounds = array<i64: 1, 1, 128>}, {pipeline_mode = #tpu.pipeline_mode<synchronous>, transform_indices = @transform_2, window_bounds = array<i64: 1, 128, 384>}, {pipeline_mode = #tpu.pipeline_mode<synchronous>, transform_indices = @transform_3, window_bounds = array<i64: 1, 128, 384>}, {pipeline_mode = #tpu.pipeline_mode<synchronous>, transform_indices = @transform_4, window_bounds = array<i64: 1, 1, 384>}, {pipeline_mode = #tpu.pipeline_mode<synchronous>, transform_indices = @transform_5, window_bounds = array<i64: 1, 1, 384>}, {transform_indices = @transform_6, window_bounds = array<i64: 1, 1, 128>}, {pipeline_mode = #tpu.pipeline_mode<synchronous>, transform_indices = @transform_7, window_bounds = array<i64: 1, 1, 128>}]} {
    %c0_i32 = arith.constant 0 : i32
    %0 = arith.cmpi eq, %arg0, %c0_i32 : i32
    %1 = arith.extui %0 : i1 to i32
    %c0_i32_0 = arith.constant 0 : i32
    %2 = arith.cmpi ne, %1, %c0_i32_0 : i32
    scf.if %2 {
      %c0_28 = arith.constant 0 : index
      %c0_29 = arith.constant 0 : index
      %c0_30 = arith.constant 0 : index
      %53 = vector.load %arg3[%c0_28, %c0_29, %c0_30] : memref<1x1x128xf32, #tpu.memory_space<vmem>>, vector<1x1x128xf32>
      %c0_31 = arith.constant 0 : index
      %c0_32 = arith.constant 0 : index
      %c0_33 = arith.constant 0 : index
      %54 = vector.load %arg9[%c0_31, %c0_32, %c0_33] : memref<1x1x128xf32, #tpu.memory_space<vmem>>, vector<1x1x128xf32>
      tpu.vector_store %arg9[%c0_31, %c0_32, %c0_33], %53 {strides = array<i32>} : memref<1x1x128xf32, #tpu.memory_space<vmem>>, vector<1x1x128xf32>,
    } else {
    }
    %c0 = arith.constant 0 : index
    %c0_1 = arith.constant 0 : index
    %c0_2 = arith.constant 0 : index
    %3 = vector.load %arg2[%c0, %c0_1, %c0_2] : memref<1x1x128xbf16, #tpu.memory_space<vmem>>, vector<1x1x128xbf16>
    %4 = vector.shape_cast %3 : vector<1x1x128xbf16> to vector<1x128xbf16>
    %c0_3 = arith.constant 0 : index
    %c0_4 = arith.constant 0 : index
    %c0_5 = arith.constant 0 : index
    %5 = vector.load %arg9[%c0_3, %c0_4, %c0_5] : memref<1x1x128xf32, #tpu.memory_space<vmem>>, vector<1x1x128xf32>
    %6 = vector.shape_cast %5 : vector<1x1x128xf32> to vector<1x128xf32>
    %c0_6 = arith.constant 0 : index
    %c0_7 = arith.constant 0 : index
    %c0_8 = arith.constant 0 : index
    %7 = vector.load %arg4[%c0_6, %c0_7, %c0_8] : memref<1x128x384xbf16, #tpu.memory_space<vmem>>, vector<1x128x384xbf16>
    %8 = vector.shape_cast %7 : vector<1x128x384xbf16> to vector<128x384xbf16>
    %cst = arith.constant dense<0.000000e+00> : vector<1x384xf32>
    %9 = tpu.matmul %4, %8, %cst {dimension_numbers = #tpu.dot_dimension_numbers<[1], [0], [0], [1], [0, 0, 1, 1], [], []>} : vector<1x128xbf16>, vector<128x384xbf16>, vector<1x384xf32> -> vector<1x384xf32>
    %c0_9 = arith.constant 0 : index
    %c0_10 = arith.constant 0 : index
    %c0_11 = arith.constant 0 : index
    %10 = vector.load %arg6[%c0_9, %c0_10, %c0_11] : memref<1x1x384xf32, #tpu.memory_space<vmem>>, vector<1x1x384xf32>
    %11 = vector.shape_cast %10 : vector<1x1x384xf32> to vector<1x384xf32>
    %12 = arith.addf %9, %11 : vector<1x384xf32>
    %13 = arith.truncf %6 : vector<1x128xf32> to vector<1x128xbf16>
    %c0_12 = arith.constant 0 : index
    %c0_13 = arith.constant 0 : index
    %c0_14 = arith.constant 0 : index
    %14 = vector.load %arg5[%c0_12, %c0_13, %c0_14] : memref<1x128x384xbf16, #tpu.memory_space<vmem>>, vector<1x128x384xbf16>
    %15 = vector.shape_cast %14 : vector<1x128x384xbf16> to vector<128x384xbf16>
    %cst_15 = arith.constant dense<0.000000e+00> : vector<1x384xf32>
    %16 = tpu.matmul %13, %15, %cst_15 {dimension_numbers = #tpu.dot_dimension_numbers<[1], [0], [0], [1], [0, 0, 1, 1], [], []>} : vector<1x128xbf16>, vector<128x384xbf16>, vector<1x384xf32> -> vector<1x384xf32>
    %c0_16 = arith.constant 0 : index
    %c0_17 = arith.constant 0 : index
    %c0_18 = arith.constant 0 : index
    %17 = vector.load %arg7[%c0_16, %c0_17, %c0_18] : memref<1x1x384xf32, #tpu.memory_space<vmem>>, vector<1x1x384xf32>
    %18 = vector.shape_cast %17 : vector<1x1x384xf32> to vector<1x384xf32>
    %19 = arith.addf %16, %18 : vector<1x384xf32>
    %20 = vector.extract_strided_slice %12 {offsets = [0, 0], sizes = [1, 128], strides = [1, 1]} : vector<1x384xf32> to vector<1x128xf32>
    %21 = vector.extract_strided_slice %19 {offsets = [0, 0], sizes = [1, 128], strides = [1, 1]} : vector<1x384xf32> to vector<1x128xf32>
    %22 = arith.addf %20, %21 : vector<1x128xf32>
    %23 = arith.negf %22 : vector<1x128xf32>
    %24 = math.exp %23 : vector<1x128xf32>
    %cst_19 = arith.constant 1.000000e+00 : f32
    %25 = vector.broadcast %cst_19 : f32 to vector<1x128xf32>
    %26 = arith.addf %25, %24 : vector<1x128xf32>
    %27 = arith.divf %25, %26 : vector<1x128xf32>
    %28 = vector.extract_strided_slice %12 {offsets = [0, 128], sizes = [1, 128], strides = [1, 1]} : vector<1x384xf32> to vector<1x128xf32>
    %29 = vector.extract_strided_slice %19 {offsets = [0, 128], sizes = [1, 128], strides = [1, 1]} : vector<1x384xf32> to vector<1x128xf32>
    %30 = arith.addf %28, %29 : vector<1x128xf32>
    %31 = arith.negf %30 : vector<1x128xf32>
    %32 = math.exp %31 : vector<1x128xf32>
    %cst_20 = arith.constant 1.000000e+00 : f32
    %33 = vector.broadcast %cst_20 : f32 to vector<1x128xf32>
    %34 = arith.addf %33, %32 : vector<1x128xf32>
    %35 = arith.divf %33, %34 : vector<1x128xf32>
    %36 = vector.extract_strided_slice %12 {offsets = [0, 256], sizes = [1, 128], strides = [1, 1]} : vector<1x384xf32> to vector<1x128xf32>
    %37 = vector.extract_strided_slice %19 {offsets = [0, 256], sizes = [1, 128], strides = [1, 1]} : vector<1x384xf32> to vector<1x128xf32>
    %38 = arith.mulf %27, %37 : vector<1x128xf32>
    %39 = arith.addf %36, %38 : vector<1x128xf32>
    %40 = math.tanh %39 : vector<1x128xf32>
    %cst_21 = arith.constant 1.000000e+00 : f32
    %41 = vector.broadcast %cst_21 : f32 to vector<1x128xf32>
    %42 = arith.subf %41, %35 : vector<1x128xf32>
    %43 = arith.mulf %42, %40 : vector<1x128xf32>
    %44 = arith.mulf %35, %6 : vector<1x128xf32>
    %45 = arith.addf %43, %44 : vector<1x128xf32>
    %c0_22 = arith.constant 0 : index
    %c0_23 = arith.constant 0 : index
    %c0_24 = arith.constant 0 : index
    %46 = vector.load %arg9[%c0_22, %c0_23, %c0_24] : memref<1x1x128xf32, #tpu.memory_space<vmem>>, vector<1x1x128xf32>
    %47 = vector.shape_cast %46 : vector<1x1x128xf32> to vector<1x128xf32>
    %48 = vector.shape_cast %45 : vector<1x128xf32> to vector<1x1x128xf32>
    tpu.vector_store %arg9[%c0_22, %c0_23, %c0_24], %48 {strides = array<i32>} : memref<1x1x128xf32, #tpu.memory_space<vmem>>, vector<1x1x128xf32>,
    %49 = arith.truncf %45 : vector<1x128xf32> to vector<1x128xbf16>
    %c0_25 = arith.constant 0 : index
    %c0_26 = arith.constant 0 : index
    %c0_27 = arith.constant 0 : index
    %50 = vector.load %arg8[%c0_25, %c0_26, %c0_27] : memref<1x1x128xbf16, #tpu.memory_space<vmem>>, vector<1x1x128xbf16>
    %51 = vector.shape_cast %50 : vector<1x1x128xbf16> to vector<1x128xbf16>
    %52 = vector.shape_cast %49 : vector<1x128xbf16> to vector<1x1x128xbf16>
    tpu.vector_store %arg8[%c0_25, %c0_26, %c0_27], %52 {strides = array<i32>} : memref<1x1x128xbf16, #tpu.memory_space<vmem>>, vector<1x1x128xbf16>,
    return
  }
  func.func @transform_0(%arg0: i32, %arg1: memref<8xi32, #tpu.memory_space<smem>>) -> (i32, i32, i32) {
    %0 = arith.index_cast %arg0 : i32 to index
    %1 = memref.load %arg1[%0] : memref<8xi32, #tpu.memory_space<smem>>
    %c0_i32 = arith.constant 0 : i32
    %c0_i32_0 = arith.constant 0 : i32
    %c0_i32_1 = arith.constant 0 : i32
    return %1, %c0_i32, %c0_i32_0 : i32, i32, i32
  }
  func.func @transform_1(%arg0: i32, %arg1: memref<8xi32, #tpu.memory_space<smem>>) -> (i32, i32, i32) {
    %c0_i32 = arith.constant 0 : i32
    %c0_i32_0 = arith.constant 0 : i32
    %c0_i32_1 = arith.constant 0 : i32
    %c0_i32_2 = arith.constant 0 : i32
    return %c0_i32, %c0_i32_0, %c0_i32_1 : i32, i32, i32
  }
  func.func @transform_2(%arg0: i32, %arg1: memref<8xi32, #tpu.memory_space<smem>>) -> (i32, i32, i32) {
    %c0_i32 = arith.constant 0 : i32
    %c0_i32_0 = arith.constant 0 : i32
    %c0_i32_1 = arith.constant 0 : i32
    %c0_i32_2 = arith.constant 0 : i32
    return %c0_i32, %c0_i32_0, %c0_i32_1 : i32, i32, i32
  }
  func.func @transform_3(%arg0: i32, %arg1: memref<8xi32, #tpu.memory_space<smem>>) -> (i32, i32, i32) {
    %c0_i32 = arith.constant 0 : i32
    %c0_i32_0 = arith.constant 0 : i32
    %c0_i32_1 = arith.constant 0 : i32
    %c0_i32_2 = arith.constant 0 : i32
    return %c0_i32, %c0_i32_0, %c0_i32_1 : i32, i32, i32
  }
  func.func @transform_4(%arg0: i32, %arg1: memref<8xi32, #tpu.memory_space<smem>>) -> (i32, i32, i32) {
    %c0_i32 = arith.constant 0 : i32
    %c0_i32_0 = arith.constant 0 : i32
    %c0_i32_1 = arith.constant 0 : i32
    %c0_i32_2 = arith.constant 0 : i32
    return %c0_i32, %c0_i32_0, %c0_i32_1 : i32, i32, i32
  }
  func.func @transform_5(%arg0: i32, %arg1: memref<8xi32, #tpu.memory_space<smem>>) -> (i32, i32, i32) {
    %c0_i32 = arith.constant 0 : i32
    %c0_i32_0 = arith.constant 0 : i32
    %c0_i32_1 = arith.constant 0 : i32
    %c0_i32_2 = arith.constant 0 : i32
    return %c0_i32, %c0_i32_0, %c0_i32_1 : i32, i32, i32
  }
  func.func @transform_6(%arg0: i32, %arg1: memref<8xi32, #tpu.memory_space<smem>>) -> (i32, i32, i32) {
    %c0_i32 = arith.constant 0 : i32
    %c0_i32_0 = arith.constant 0 : i32
    %c0_i32_1 = arith.constant 0 : i32
    return %arg0, %c0_i32, %c0_i32_0 : i32, i32, i32
  }
  func.func @transform_7(%arg0: i32, %arg1: memref<8xi32, #tpu.memory_space<smem>>) -> (i32, i32, i32) {
    %c0_i32 = arith.constant 0 : i32
    %c0_i32_0 = arith.constant 0 : i32
    %c0_i32_1 = arith.constant 0 : i32
    %c0_i32_2 = arith.constant 0 : i32
    return %c0_i32, %c0_i32_0, %c0_i32_1 : i32, i32, i32
  }
}

</mosaic_0001>

<bundles_post_ra>
// kernel: tpu_custom_call.1
= control target key start
LH: loop header
LB: loop body
LE: loop exit
PB: predicated region body
PF: predicated region fallthrough
CT: control target
= control target key end

     0   :  { %s1315_s30 = smov [#allocation3]   ;;  %s1454_s0 = inlined_call_operand.vmem [shape: s32[8], index: 0, kind: input, shape index: {}]   ;;  %s1455_s1 = inlined_call_operand.vmem [shape: bf16[64,1,128], index: 1, kind: input, shape index: {}]   ;;  %s1456_s2 = inlined_call_operand.vmem [shape: f32[1,1,128], index: 2, kind: input, shape index: {}]   ;;  %s1457_s3 = inlined_call_operand.hbm [shape: bf16[1,128,384], index: 3, kind: input, shape index: {}]   ;;  %s1458_s4 = inlined_call_operand.hbm [shape: bf16[1,128,384], index: 4, kind: input, shape index: {}]   ;;  %s1459_s5 = inlined_call_operand.vmem [shape: f32[1,1,384], index: 5, kind: input, shape index: {}]   ;;  %s1460_s6 = inlined_call_operand.vmem [shape: f32[1,1,384], index: 6, kind: input, shape index: {}]   ;;  %s1461_s7 = inlined_call_operand.vmem [shape: bf16[8,1,128], index: 7, kind: output, shape index: {0}]   ;;  %s1462_s8 = inlined_call_operand.hbm [shape: f32[1,1,128], index: 8, kind: output, shape index: {1}]  }
   0x1   :  { %s15_s29 = sshll.u32 %s1454_s0, 4  ;;  %s16_s29 = int_to_ptr.vmem [resolvable:$true] %s15_s29 }
   0x2   :  { %18 = dma.vmem_to_smem %s16_s29, 16, %s1315_s30, [#allocation2] }
   0x3   :  { %1297 = dma.done.wait [#allocation2], 16 }
   0x4   :  { %1298 = vsyncadd [#allocation2], 4294967280 }
   0x5   :  { %21 = sfence }
   0x6   :  { %22 = vsyncpa [#allocation5], 0 }
   0x7   :  { %23 = vsyncpa [#allocation8], 0 }
   0x8   :  { %24 = vsyncpa [#allocation6], 0  ;;  %s1369_s9 = smov 0  }
   0x9 LB: > { %s229_s0 = sshll.u32 %s1457_s3, 4  ;;  %s1378_s12 = sadd.s32 4294967295, %s1313_s9   ;;  %s1313_s9 = sphi %s1369_s9, %s30_s9   ;;  %s230_s0 = int_to_ptr.hbm [resolvable:$true] %s229_s0 }
   0xa   : > { %p890_p0 = scmp.ge.s32.totalorder %s1313_s9, 1  ;;  %p215_p1 = scmp.lt.s32.totalorder %s1313_s9, 9 }
   0xb   : > { %p891_p2 = scmp.ne.s32.totalorder %s1378_s12, 0  ;;  %p1163_p3 = scmp.eq.s32.totalorder %s1378_s12, 0 }
   0xc   : > { %p1384_p4 = pnand %p890_p0, %p215_p1  ;;  %s1316_s14 = smov [#allocation4]  }
   0xd   : > { %s231_s15 = sshll.u32 %s1316_s14, 4  ;;  %s243_s18 = sshll.u32 %s1458_s4, 4  ;;  %s232_s15 = int_to_ptr.vmem [resolvable:$true] %s231_s15  ;;  %s244_s18 = int_to_ptr.hbm [resolvable:$true] %s243_s18 }
   0xe   : > { %p1156_p5 = pneg %p1384_p4  ;;  %s1317_s19 = smov [#allocation7]  }
   0xf   : > { %s245_s20 = sshll.u32 %s1317_s19, 4  ;;  %s1318_s21 = smov 192   ;;  %s246_s20 = int_to_ptr.vmem [resolvable:$true] %s245_s20 }
  0x10   : > { %p1157_p6 = pnand %p1163_p3, %p1156_p5  ;;  %s1319_s22 = smov 12  }
  0x11   : > { %275 = sbr.rel (%p1384_p4) target bundleno = 273 (0x111), region = 44 }
  0x12   : > { %1159 = dma.hbm_to_vmem [thread:$0]  (!%p1157_p6), %s230_s0, 3072, %s232_s15, [#allocation5], %s1318_s21, %s1318_s21, %s1319_s22  }
  0x13   : > { %1162 = dma.hbm_to_vmem [thread:$0]  (!%p1157_p6), %s244_s18, 3072, %s246_s20, [#allocation8], %s1318_s21, %s1318_s21, %s1319_s22  }
  0x16   : > { %1300 = dma.done.wait (%p1163_p3), [#allocation5], 3072  }
  0x17   : > { %1302 = vsyncadd (%p1163_p3), [#allocation5], 4294964224 }
  0x18   : > { %1304 = dma.done.wait (%p1163_p3), [#allocation8], 3072  }
  0x19   : > { %1306 = vsyncadd (%p1163_p3), [#allocation8], 4294964224  ;;  %p315_p7 = scmp.lt.s32.totalorder %s1378_s12, 7  ;;  %s310_s23 = sld [smem:[#allocation3 + %s1378_s12]] }
  0x1b   : > { %s316_s24 = scalar_select %p315_p7, %s1378_s12, 7 }
  0x1d   : > { %s1411_s27 = scalar_lea.vmem %s1461_s7, %s316_s24 }
  0x1e   : > { %321 = sbr.rel (%p891_p2) target bundleno = 37 (0x25), region = 56 }
  0x1f   : > { %p311_p8 = scmp.lt.s32.totalorder %s310_s23, 63 }
  0x21   : > { %s1465_s23 = smov (!%p311_p8, %s310_s23), 63 }
  0x22   : > { %s313_s30 = scalar_lea.vmem %s1455_s1, %s1465_s23 }
  0x23   : > { %v322_v0 = vld [vmem:[%s1456_s2] sm:$0x1] }
  0x24   : > { %323 = vst [vmem:[#allocation9] sm:$0x1] %v322_v0 }
  0x25 PF: > { %v984_v1 = vld [vmem:[#allocation4 + $0xa8] sm:$0xf]  ;;  %v1118_v2 = vld [vmem:[#allocation4 + $0xb0] sm:$0xf0]  ;;  %v972_v6 = vld [vmem:[#allocation4 + $0x90] sm:$0xf] }
  0x26   : > { %v1080_v3 = vld [vmem:[#allocation7 + $0xa8] sm:$0xf]  ;;  %v985_v4 = vor.u32 %v1118_v2, %v984_v1  ;;  %v1142_v5 = vld [vmem:[#allocation7 + $0xb0] sm:$0xf0]  ;;  %v1115_v7 = vld [vmem:[#allocation4 + $0x98] sm:$0xf0] }
  0x27   : > { %v1081_v8 = vor.u32 %v1142_v5, %v1080_v3  ;;  %v1068_v9 = vld [vmem:[#allocation7 + $0x90] sm:$0xf]  ;;  %v1139_v10 = vld [vmem:[#allocation7 + $0x98] sm:$0xf0]  ;;  %v1117_v11 = vld [vmem:[#allocation4 + $0xac] sm:$0xf]  ;;  %v973_v12 = vor.u32 %v1115_v7, %v972_v6 }
  0x28   : > { %494 = vmatpush.bf16.msra.mxu0 %v985_v4  ;;  %v986_v13 = vld [vmem:[#allocation4 + $0xb4] sm:$0xf0]  ;;  %v1069_v14 = vor.u32 %v1139_v10, %v1068_v9  ;;  %v1112_v17 = vld [vmem:[#allocation4 + $0x80] sm:$0xf0]  ;;  %v1114_v18 = vld [vmem:[#allocation4 + $0x94] sm:$0xf] }
  0x29   : > { %702 = vmatpush.bf16.msra.mxu3 %v1081_v8  ;;  %v989_v15 = vor.u32 %v1117_v11, %v986_v13  ;;  %v960_v16 = vld [vmem:[#allocation4 + $0x78] sm:$0xf]  ;;  %v1136_v20 = vld [vmem:[#allocation7 + $0x80] sm:$0xf0]  ;;  %v974_v21 = vld [vmem:[#allocation4 + $0x9c] sm:$0xf0] }
  0x2a   : > { %v1056_v19 = vld [vmem:[#allocation7 + $0x78] sm:$0xf]  ;;  %v977_v22 = vor.u32 %v1114_v18, %v974_v21  ;;  %v961_v23 = vor.u32 %v1112_v17, %v960_v16  ;;  %v1111_v24 = vld [vmem:[#allocation4 + $0x7c] sm:$0xf]  ;;  %v962_v25 = vld [vmem:[#allocation4 + $0x84] sm:$0xf0] }
  0x2b   : > { %507 = vmatpush.bf16.msra.mxu1 %v989_v15  ;;  %v1057_v26 = vor.u32 %v1136_v20, %v1056_v19  ;;  %v948_v27 = vld [vmem:[#allocation4 + $0x60] sm:$0xf]  ;;  %v1109_v28 = vld [vmem:[#allocation4 + $0x68] sm:$0xf0]  ;;  %v965_v31 = vor.u32 %v1111_v24, %v962_v25  ;;  %v1108_v33 = vld [vmem:[#allocation4 + $0x64] sm:$0xf] }
  0x2c   : > { %495 = vmatpush.bf16.msra.mxu0 %v973_v12  ;;  %v1044_v29 = vld [vmem:[#allocation7 + $0x60] sm:$0xf]  ;;  %v1133_v30 = vld [vmem:[#allocation7 + $0x68] sm:$0xf0]  ;;  %v949_v32 = vor.u32 %v1109_v28, %v948_v27  ;;  %v950_v34 = vld [vmem:[#allocation4 + $0x6c] sm:$0xf0] }
  0x2d   : > { %703 = vmatpush.bf16.msra.mxu3 %v1069_v14  ;;  %v1045_v35 = vor.u32 %v1133_v30, %v1044_v29  ;;  %v936_v36 = vld [vmem:[#allocation4 + $0x48] sm:$0xf]  ;;  %v1106_v37 = vld [vmem:[#allocation4 + $0x50] sm:$0xf0]  ;;  %v953_v40 = vor.u32 %v1108_v33, %v950_v34  ;;  %v924_v42 = vld [vmem:[#allocation4 + $0x30] sm:$0xf] }
  0x2e   : > { %v1032_v38 = vld [vmem:[#allocation7 + $0x48] sm:$0xf]  ;;  %v1130_v39 = vld [vmem:[#allocation7 + $0x50] sm:$0xf0]  ;;  %v937_v41 = vor.u32 %v1106_v37, %v936_v36  ;;  %v1105_v43 = vld [vmem:[#allocation4 + $0x4c] sm:$0xf] }
  0x2f   : > { %508 = vmatpush.bf16.msra.mxu1 %v977_v22  ;;  %v938_v44 = vld [vmem:[#allocation4 + $0x54] sm:$0xf0]  ;;  %v1033_v45 = vor.u32 %v1130_v39, %v1032_v38  ;;  %v1103_v46 = vld [vmem:[#allocation4 + $0x38] sm:$0xf0]  ;;  %v992_v47 = vld [vmem:[#allocation4 + $0xb0] sm:$0xf] }
  0x30   : > { %496 = vmatpush.bf16.msra.mxu0 %v961_v23  ;;  %v1119_v48 = vld [vmem:[#allocation4 + $0xb8] sm:$0xf0]  ;;  %v1020_v49 = vld [vmem:[#allocation7 + $0x30] sm:$0xf]  ;;  %v941_v52 = vor.u32 %v1105_v43, %v938_v44  ;;  %v980_v53 = vld [vmem:[#allocation4 + $0x98] sm:$0xf]  ;;  %v925_v54 = vor.u32 %v1103_v46, %v924_v42 }
  0x31   : > { %704 = vmatpush.bf16.msra.mxu3 %v1057_v26  ;;  %v1127_v50 = vld [vmem:[#allocation7 + $0x38] sm:$0xf0]  ;;  %v993_v51 = vor.u32 %v1119_v48, %v992_v47  ;;  %v1102_v55 = vld [vmem:[#allocation4 + $0x34] sm:$0xf]  ;;  %v926_v56 = vld [vmem:[#allocation4 + $0x3c] sm:$0xf0] }
  0x32   : > { %v1116_v57 = vld [vmem:[#allocation4 + $0xa0] sm:$0xf0]  ;;  %v1021_v58 = vor.u32 %v1127_v50, %v1020_v49  ;;  %v912_v59 = vld [vmem:[#allocation4 + $0x18] sm:$0xf]  ;;  %v968_v62 = vld [vmem:[#allocation4 + $0x80] sm:$0xf]  ;;  %v929_v2 = vor.u32 %v1102_v55, %v926_v56 }
  0x33   : > { %509 = vmatpush.bf16.msra.mxu1 %v965_v31  ;;  %520 = vmatpush.bf16.msra.mxu2 %v993_v51  ;;  %v1100_v60 = vld [vmem:[#allocation4 + $0x20] sm:$0xf0]  ;;  %v981_v61 = vor.u32 %v1116_v57, %v980_v53  ;;  %v1008_v63 = vld [vmem:[#allocation7 + $0x18] sm:$0xf]  ;;  %v1113_v1 = vld [vmem:[#allocation4 + $0x88] sm:$0xf0] }
  0x34   : > { %497 = vmatpush.bf16.msra.mxu0 %v949_v32  ;;  %v1124_v0 = vld [vmem:[#allocation7 + $0x20] sm:$0xf0]  ;;  %v900_v3 = vld [vmem:[#allocation4] sm:$0xf]  ;;  %v913_v4 = vor.u32 %v1100_v60, %v912_v59  ;;  %v1097_v5 = vld [vmem:[#allocation4 + $0x8] sm:$0xf0]  ;;  %v969_v8 = vor.u32 %v1113_v1, %v968_v62 }
  0x35   : > { %705 = vmatpush.bf16.msra.mxu3 %v1045_v35  ;;  %v1099_v6 = vld [vmem:[#allocation4 + $0x1c] sm:$0xf]  ;;  %v914_v7 = vld [vmem:[#allocation4 + $0x24] sm:$0xf0]  ;;  %v1009_v9 = vor.u32 %v1124_v0, %v1008_v63  ;;  %v996_v10 = vld [vmem:[#allocation7] sm:$0xf]  ;;  %v901_v17 = vor.u32 %v1097_v5, %v900_v3 }
  0x36   : > { %v956_v11 = vld [vmem:[#allocation4 + $0x68] sm:$0xf]  ;;  %v1110_v12 = vld [vmem:[#allocation4 + $0x70] sm:$0xf0]  ;;  %v1121_v13 = vld [vmem:[#allocation7 + $0x8] sm:$0xf0]  ;;  %v917_v16 = vor.u32 %v1099_v6, %v914_v7 }
  0x37   : > { %510 = vmatpush.bf16.msra.mxu1 %v953_v40  ;;  %521 = vmatpush.bf16.msra.mxu2 %v981_v61  ;;  %v1141_v14 = vld [vmem:[#allocation7 + $0xac] sm:$0xf]  ;;  %v1082_v15 = vld [vmem:[#allocation7 + $0xb4] sm:$0xf0]  ;;  %v1424_v18 = vld [vmem:[#allocation9] sm:$0x1]  ;;  %v957_v21 = vor.u32 %v1110_v12, %v956_v11  ;;  %v997_v22 = vor.u32 %v1121_v13, %v996_v10 }
  0x38   : > { %498 = vmatpush.bf16.msra.mxu0 %v937_v41  ;;  %v1096_v19 = vld [vmem:[#allocation4 + $0x4] sm:$0xf]  ;;  %v902_v20 = vld [vmem:[#allocation4 + $0xc] sm:$0xf0]  ;;  %v1085_v23 = vor.u32 %v1141_v14, %v1082_v15  ;;  %v1138_v24 = vld [vmem:[#allocation7 + $0x94] sm:$0xf]  ;;  %v1428_v31 = vpack.c.bf16 %v1424_v18, %v1424_v18 }
  0x39   : > { %706 = vmatpush.bf16.msra.mxu3 %v1033_v45  ;;  %v1088_v25 = vld [vmem:[#allocation7 + $0xb0] sm:$0xf]  ;;  %v1143_v26 = vld [vmem:[#allocation7 + $0xb8] sm:$0xf0]  ;;  %v1070_v27 = vld [vmem:[#allocation7 + $0x9c] sm:$0xf0]  ;;  %v905_v30 = vor.u32 %v1096_v19, %v902_v20 }
  0x3a   : > { %v944_v28 = vld [vmem:[#allocation4 + $0x50] sm:$0xf]  ;;  %v1107_v29 = vld [vmem:[#allocation4 + $0x58] sm:$0xf0]  ;;  %v324_v32 = vld [vmem:[%s313_s30] sm:$0x1]  ;;  %v1089_v33 = vor.u32 %v1143_v26, %v1088_v25  ;;  %v1073_v35 = vor.u32 %v1138_v24, %v1070_v27 }
  0x3b   : > { %511 = vmatpush.bf16.msra.mxu1 %v941_v52  ;;  %522 = vmatpush.bf16.msra.mxu2 %v969_v8  ;;  %v1135_v34 = vld [vmem:[#allocation7 + $0x7c] sm:$0xf]  ;;  %v1076_v36 = vld [vmem:[#allocation7 + $0x98] sm:$0xf]  ;;  %v1140_v37 = vld [vmem:[#allocation7 + $0xa0] sm:$0xf0]  ;;  %v945_v38 = vor.u32 %v1107_v29, %v944_v28 }
  0x3c   : > { %499 = vmatpush.bf16.msra.mxu0 %v925_v54  ;;  %v1058_v39 = vld [vmem:[#allocation7 + $0x84] sm:$0xf0]  ;;  %v932_v40 = vld [vmem:[#allocation4 + $0x38] sm:$0xf]  ;;  %v1104_v41 = vld [vmem:[#allocation4 + $0x40] sm:$0xf0]  ;;  %v1077_v42 = vor.u32 %v1140_v37, %v1076_v36 }
  0x3d   : > { %707 = vmatpush.bf16.msra.mxu3 %v1021_v58  ;;  %v1061_v43 = vor.u32 %v1135_v34, %v1058_v39  ;;  %v1132_v44 = vld [vmem:[#allocation7 + $0x64] sm:$0xf]  ;;  %v1064_v45 = vld [vmem:[#allocation7 + $0x80] sm:$0xf]  ;;  %v1137_v46 = vld [vmem:[#allocation7 + $0x88] sm:$0xf0]  ;;  %v933_v47 = vor.u32 %v1104_v41, %v932_v40 }
  0x3e   : > { %v1046_v48 = vld [vmem:[#allocation7 + $0x6c] sm:$0xf0]  ;;  %v920_v49 = vld [vmem:[#allocation4 + $0x20] sm:$0xf]  ;;  %v1101_v50 = vld [vmem:[#allocation4 + $0x28] sm:$0xf0]  ;;  %v1065_v51 = vor.u32 %v1137_v46, %v1064_v45 }
  0x3f   : > { %512 = vmatpush.bf16.msra.mxu1 %v929_v2  ;;  %523 = vmatpush.bf16.msra.mxu2 %v957_v21  ;;  %v1049_v52 = vor.u32 %v1132_v44, %v1046_v48  ;;  %v1129_v53 = vld [vmem:[#allocation7 + $0x4c] sm:$0xf]  ;;  %v1052_v54 = vld [vmem:[#allocation7 + $0x68] sm:$0xf]  ;;  %v1134_v55 = vld [vmem:[#allocation7 + $0x70] sm:$0xf0]  ;;  %v921_v56 = vor.u32 %v1101_v50, %v920_v49 }
  0x40   : > { %500 = vmatpush.bf16.msra.mxu0 %v913_v4  ;;  %v1034_v57 = vld [vmem:[#allocation7 + $0x54] sm:$0xf0]  ;;  %v908_v58 = vld [vmem:[#allocation4 + $0x8] sm:$0xf]  ;;  %v1098_v59 = vld [vmem:[#allocation4 + $0x10] sm:$0xf0]  ;;  %v1053_v60 = vor.u32 %v1134_v55, %v1052_v54 }
  0x41   : > { %708 = vmatpush.bf16.msra.mxu3 %v1009_v9  ;;  %v1037_v61 = vor.u32 %v1129_v53, %v1034_v57  ;;  %v1040_v62 = vld [vmem:[#allocation7 + $0x50] sm:$0xf]  ;;  %v1131_v63 = vld [vmem:[#allocation7 + $0x58] sm:$0xf0]  ;;  %v909_v0 = vor.u32 %v1098_v59, %v908_v58  ;;  %v1126_v1 = vld [vmem:[#allocation7 + $0x34] sm:$0xf] }
  0x42   : > { %v1022_v2 = vld [vmem:[#allocation7 + $0x3c] sm:$0xf0]  ;;  %v1041_v3 = vor.u32 %v1131_v63, %v1040_v62  ;;  %v1028_v5 = vld [vmem:[#allocation7 + $0x38] sm:$0xf]  ;;  %v1128_v6 = vld [vmem:[#allocation7 + $0x40] sm:$0xf0] }
  0x43   : > { %513 = vmatpush.bf16.msra.mxu1 %v917_v16  ;;  %524 = vmatpush.bf16.msra.mxu2 %v945_v38  ;;  %v1025_v4 = vor.u32 %v1126_v1, %v1022_v2  ;;  %v1123_v7 = vld [vmem:[#allocation7 + $0x1c] sm:$0xf]  ;;  %v1010_v8 = vld [vmem:[#allocation7 + $0x24] sm:$0xf0]  ;;  %v1029_v9 = vor.u32 %v1128_v6, %v1028_v5  ;;  %v1016_v11 = vld [vmem:[#allocation7 + $0x20] sm:$0xf] }
  0x44   : > { %501 = vmatpush.bf16.msra.mxu0 %v901_v17  ;;  %v1013_v10 = vor.u32 %v1123_v7, %v1010_v8  ;;  %v1125_v12 = vld [vmem:[#allocation7 + $0x28] sm:$0xf0]  ;;  %v1120_v13 = vld [vmem:[#allocation7 + $0x4] sm:$0xf]  ;;  %v998_v14 = vld [vmem:[#allocation7 + $0xc] sm:$0xf0] }
  0x45   : > { %709 = vmatpush.bf16.msra.mxu3 %v997_v22  ;;  %v1017_v15 = vor.u32 %v1125_v12, %v1016_v11  ;;  %v1001_v16 = vor.u32 %v1120_v13, %v998_v14  ;;  %v1004_v17 = vld [vmem:[#allocation7 + $0x8] sm:$0xf]  ;;  %v1122_v19 = vld [vmem:[#allocation7 + $0x10] sm:$0xf0]  ;;  %v358_v21 = vld [vmem:[%s1459_s5] sm:$0x7] }
  0x46   : > { %v1005_v20 = vor.u32 %v1122_v19, %v1004_v17  ;;  %v488_v24 = vperm.slane %v358_v21, 0  ;;  %v489_v38 = vperm.slane %v358_v21, 1  ;;  %v490_v62 = vperm.slane %v358_v21, 2  ;;  %s1320_s18 = smov [#allocation9]   ;;  %s810_s22 = sshll.u32 %s1462_s8, 4  ;;  %s811_s22 = int_to_ptr.hbm [resolvable:$true] %s810_s22 }
  0x47   : > { %514 = vmatpush.bf16.msra.mxu1 %v905_v30  ;;  %502 = vmatmul.bf16.vlgmr.msra.gmra.mxu0 %v324_v32  ;;  %s808_s19 = sshll.u32 %s1320_s18, 4  ;;  %vm790_vm8 = vcmask 1040384   ;;  %vm791_vm9 = vsmask.f32 256  ;;  %p1167_p9 = scmp.eq.s32.totalorder %s1378_s12, 7  ;;  %s809_s19 = int_to_ptr.vmem [resolvable:$true] %s808_s19 }
  0x48   : > { %715 = vmatpush.bf16.msrb.mxu0 %v1085_v23  ;;  %710 = vmatmul.bf16.vlgmr.msra.gmra.mxu3 %v1428_v31  ;;  %v566_v23 = vld [vmem:[%s1460_s6] sm:$0x7]  ;;  %vm792_vm10 = vmand %vm790_vm8, %vm791_vm9 }
  0x49   : > { %525 = vmatpush.bf16.msra.mxu2 %v933_v47  ;;  %v696_v26 = vperm.slane %v566_v23, 0  ;;  %v697_v39 = vperm.slane %v566_v23, 1  ;;  %v698_v55 = vperm.slane %v566_v23, 2  ;;  %v793_v19 = vld [vmem:[%s1411_s27] sm:$0x1] }
  0x4a   : > { %515 = vmatmul.bf16.vlgmr.msra.gmra.mxu1 %v324_v32 }
  0x4b   : > { %728 = vmatpush.bf16.msrb.mxu1 %v1089_v33 }
  0x4c   : > { %716 = vmatpush.bf16.msrb.mxu0 %v1073_v35 }
  0x4d   : > { %526 = vmatpush.bf16.msra.mxu2 %v921_v56 }
  0x4f   : > { %729 = vmatpush.bf16.msrb.mxu1 %v1077_v42 }
  0x50   : > { %717 = vmatpush.bf16.msrb.mxu0 %v1061_v43 }
  0x51   : > { %527 = vmatpush.bf16.msra.mxu2 %v909_v0 }
  0x53   : > { %730 = vmatpush.bf16.msrb.mxu1 %v1065_v51 }
  0x54   : > { %718 = vmatpush.bf16.msrb.mxu0 %v1049_v52  ;;  %528 = vmatmul.bf16.vlgmr.msra.gmra.mxu2 %v324_v32 }
  0x57   : > { %731 = vmatpush.bf16.msrb.mxu1 %v1053_v60 }
  0x58   : > { %719 = vmatpush.bf16.msrb.mxu0 %v1037_v61 }
  0x5b   : > { %732 = vmatpush.bf16.msrb.mxu1 %v1041_v3 }
  0x5c   : > { %720 = vmatpush.bf16.msrb.mxu0 %v1025_v4 }
  0x5f   : > { %733 = vmatpush.bf16.msrb.mxu1 %v1029_v9 }
  0x60   : > { %721 = vmatpush.bf16.msrb.mxu0 %v1013_v10 }
  0x63   : > { %734 = vmatpush.bf16.msrb.mxu1 %v1017_v15 }
  0x64   : > { %722 = vmatpush.bf16.msrb.mxu0 %v1001_v16 }
  0x67   : > { %723 = vmatmul.bf16.vlgmr.msrb.gmra.mxu0 %v1428_v31  ;;  %735 = vmatpush.bf16.msrb.mxu1 %v1005_v20 }
  0x6a   : > { %736 = vmatmul.bf16.vlgmr.msrb.gmra.mxu1 %v1428_v31 }
  0xc4   : > { %v503_v22 = vpop.f32.mrf.mxu0 }
  0xc5   : > { %v504_v27 = vadd.f32 %v503_v22, %v488_v24 }
  0xc7   : > { %v516_v25 = vpop.f32.mrf.mxu1 }
  0xc8   : > { %v517_v40 = vadd.f32 %v516_v25, %v489_v38 }
  0xcb   : > { %v711_v28 = vpop.f32.mrf.mxu3 }
  0xcc   : > { %v712_v29 = vadd.f32 %v711_v28, %v696_v26  ;;  %v505_v30 = vpop.f32.mrf.mxu0 }
  0xce   : > { %v741_v32 = vadd.f32 %v712_v29, %v504_v27 }
  0xcf   : > { %v518_v33 = vpop.f32.mrf.mxu1 }
  0xd0   : > { %v1090_v34 = vmul.f32 -1.442695, %v741_v32 }
  0xd2   : > { %1183 = vpow2.f32 %v1090_v34 }
  0xd3   : > { %v713_v31 = vpop.f32.mrf.mxu3 }
  0xd7   : > { %v529_v37 = vpop.f32.mrf.mxu2 }
  0xd8   : > { %v1184_v35 = vpop.eup %1183  ;;  %v530_v1 = vadd.f32 %v529_v37, %v490_v62 }
  0xd9   : > { %v745_v36 = vadd.f32 1.0, %v1184_v35 }
  0xdb   : > { %1185 = vrcp.f32 %v745_v36  ;;  %vm751_vm0 = vweird.f32 %v745_v36  ;;  %v757_v53 = vand.u32 2147483648, %v745_v36  ;;  %v755_v56 = vand.u32 2147483647, %v745_v36 }
  0xdd   : > { %v758_v60 = vor.u32 1.1754944e-38, %v757_v53  ;;  %vm756_vm3 = vcmp.eq.f32.partialorder %v755_v56, 8.507059e+37 }
  0xdf   : > { %v531_v45 = vpop.f32.mrf.mxu2 }
  0xe1   : > { %v1186_v41 = vpop.eup %1185 }
  0xe2   : > { %v747_v44 = vmul.f32 %v1186_v41, %v745_v36  ;;  %vm752_vm1 = vweird.f32 %v1186_v41 }
  0xe3   : > { %vm753_vm2 = vmor %vm751_vm0, %vm752_vm1 }
  0xe4   : > { %v724_v42 = vpop.f32.mrf.mxu0  ;;  %v748_v48 = vsub.f32 1.0, %v747_v44 }
  0xe5   : > { %v725_v43 = vadd.f32 %v724_v42, %v697_v39 }
  0xe6   : > { %v749_v50 = vmul.f32 %v1186_v41, %v748_v48 }
  0xe7   : > { %v761_v46 = vadd.f32 %v725_v43, %v517_v40  ;;  %v737_v47 = vpop.f32.mrf.mxu1 }
  0xe8   : > { %v750_v52 = vadd.f32 %v1186_v41, %v749_v50  ;;  %v738_v61 = vadd.f32 %v737_v47, %v698_v55 }
  0xe9   : > { %v1091_v49 = vmul.f32 -1.442695, %v761_v46 }
  0xea   : > { %v754_v59 = vsel %vm753_vm2, %v1186_v41, %v750_v52 }
  0xeb   : > { %1187 = vpow2.f32 %v1091_v49  ;;  %v759_v63 = vsel %vm756_vm3, %v758_v60, %v754_v59 }
  0xec   : > { %v726_v51 = vpop.f32.mrf.mxu0  ;;  %v781_v0 = vmul.f32 %v759_v63, %v738_v61 }
  0xee   : > { %v782_v4 = vadd.f32 %v781_v0, %v530_v1 }
  0xef   : > { %v739_v54 = vpop.f32.mrf.mxu1 }
  0xf1   : > { %v1188_v57 = vpop.eup %1187 }
  0xf2   : > { %v765_v58 = vadd.f32 1.0, %v1188_v57 }
  0xf4   : > { %1189 = vrcp.f32 %v765_v58  ;;  %v777_v6 = vand.u32 2147483648, %v765_v58  ;;  %v775_v8 = vand.u32 2147483647, %v765_v58  ;;  %vm771_vm5 = vweird.f32 %v765_v58 }
  0xf5   : > { %1191 = vtanh.f32 %v782_v4 }
  0xf6   : > { %v778_v10 = vor.u32 1.1754944e-38, %v777_v6  ;;  %vm776_vm7 = vcmp.eq.f32.partialorder %v775_v8, 8.507059e+37 }
  0xfa   : > { %v1190_v2 = vpop.eup %1189 }
  0xfb   : > { %v767_v3 = vmul.f32 %v1190_v2, %v765_v58  ;;  %vm772_vm4 = vweird.f32 %v1190_v2  ;;  %v1192_v14 = vpop.eup %1191 }
  0xfc   : > { %vm773_vm6 = vmor %vm771_vm5, %vm772_vm4 }
  0xfd   : > { %v768_v5 = vsub.f32 1.0, %v767_v3 }
  0xff   : > { %v769_v7 = vmul.f32 %v1190_v2, %v768_v5 }
 0x101   : > { %v770_v9 = vadd.f32 %v1190_v2, %v769_v7 }
 0x103   : > { %v774_v11 = vsel %vm773_vm6, %v1190_v2, %v770_v9 }
 0x104   : > { %v779_v12 = vsel %vm776_vm7, %v778_v10, %v774_v11 }
 0x105   : > { %v784_v13 = vsub.f32 1.0, %v779_v12  ;;  %v786_v16 = vmul.f32 %v779_v12, %v1424_v18 }
 0x107   : > { %v785_v15 = vmul.f32 %v1192_v14, %v784_v13 }
 0x109   : > { %v787_v17 = vadd.f32 %v786_v16, %v785_v15 }
 0x10b   : > { %788 = vst [vmem:[#allocation9] sm:$0x1] %v787_v17  ;;  %v789_v20 = vpack.c.bf16 %v787_v17, %v787_v17 }
 0x10c   : > { %1153 = dma.vmem_to_hbm [thread:$0]  (%p1167_p9), %s809_s19, 16, %s811_s22, [#allocation6]  }
 0x10d   : > { %v794_v21 = vsel %vm792_vm10, %v789_v20, %v793_v19 }
 0x10e   : > { %795 = vst [vmem:[%s1411_s27] sm:$0x1] %v794_v21 }
 0x10f   : > { %1308 = dma.done.wait (%p1167_p9), [#allocation6], 16  }
 0x110   : > { %1310 = vsyncadd (%p1167_p9), [#allocation6], 4294967280 }
 0x111 PF: > { %s30_s9 = sadd.s32 1, %s1313_s9  }
 0x112   : > { %p27_p10 = scmp.ge.s32.totalorder %s30_s9, 10  }
 0x114   :  { %29 = sbr.rel (!%p27_p10) target bundleno = 9 (0x9), region = 96 }
 0x119   :  { %830 = vsyncpa [#allocation5], 1 }
 0x11a   :  { %832 = vsyncpa [#allocation5 + $0x1], 1 }
 0x11b   :  { %833 = vsyncpa [#allocation8], 1 }
 0x11c   :  { %834 = vsyncpa [#allocation6], 1 }
 0x11d   :  { %836 = vsyncpa [#allocation6 + $0x1], 1 }

</bundles_post_ra>
